<compile_context>
chip_gen: v7x
topology: tpu7x:2x2x1
jax: 0.10.0
libtpu: 0.0.40
codegen_flags: <defaults>
</compile_context>

<pallas_src>
import jax
import jax.numpy as jnp
from jax.experimental import pallas as pl
from jax.experimental.pallas import tpu as pltpu


# ----------------------------------------------------------------------------
# Elementwise activation kernels (hard-sigmoid / hard-swish)
# ----------------------------------------------------------------------------

def _hard_sigmoid_kernel(x_ref, o_ref):
    x = x_ref[...].astype(jnp.float32)
    y = jnp.clip(x + 3.0, 0.0, 6.0) * (1.0 / 6.0)          # relu6(x+3)/6
    o_ref[...] = y.astype(o_ref.dtype)


def _hard_swish_kernel(x_ref, o_ref):
    x = x_ref[...].astype(jnp.float32)
    y = x * (jnp.clip(x + 3.0, 0.0, 6.0) * (1.0 / 6.0))    # x * relu6(x+3)/6
    o_ref[...] = y.astype(o_ref.dtype)


def _elementwise_call(kernel_body, x, *, target_block_bytes=2 << 20):
    """Run an elementwise kernel on an arbitrary-shaped tensor, lane-dense."""
    orig_shape, orig_dtype = x.shape, x.dtype
    total = x.size
    itemsize = jnp.dtype(orig_dtype).itemsize

    # Widest lane count (multiple of 128) that divides the flat length ->
    # unmasked, lane-dense vst on the output.
    lanes = next((c for c in (1024, 512, 256, 128) if total % c == 0), None)
    padded_total = total
    if lanes is None:
        # TODO(synk): non-128-aligned sizes take a minimal pad+slice round
        # trip; MobileNetV3 activation maps never hit this path.
        lanes = 128
        padded_total = ((total + 8 * lanes - 1) // (8 * lanes)) * (8 * lanes)

    flat = x.reshape(-1)
    if padded_total != total:
        flat = jnp.pad(flat, (0, padded_total - total))
    rows = padded_total // lanes
    x2d = flat.reshape(rows, lanes)

    # Block rows: ~target_block_bytes per block, multiple of 8 (or the full
    # array when it is smaller than one aligned block).  When the tensor is
    # large enough, force >= 2 grid steps so the v7x megacore split engages.
    if rows % 8 != 0 or rows < 16:
        row_tile = rows
    else:
        target_rows = max(8, (target_block_bytes // (lanes * itemsize)) // 8 * 8)
        half_rows = max(8, (rows // 2) // 8 * 8)
        row_tile = min(target_rows, half_rows)
    grid = (pl.cdiv(rows, row_tile),)

    out2d = pl.pallas_call(
        kernel_body,
        out_shape=jax.ShapeDtypeStruct((rows, lanes), orig_dtype),
        grid_spec=pltpu.PrefetchScalarGridSpec(
            num_scalar_prefetch=0,
            grid=grid,
            in_specs=[pl.BlockSpec((row_tile, lanes), lambda i: (i, 0))],
            out_specs=pl.BlockSpec((row_tile, lanes), lambda i: (i, 0)),
        ),
        compiler_params=pltpu.CompilerParams(
            dimension_semantics=("parallel",),
            vmem_limit_bytes=32 << 20,   # safe on v5e/v6e (128 MiB) and v7x (64 MiB)
        ),
        cost_estimate=pl.CostEstimate(
            flops=4 * total,
            transcendentals=0,
            bytes_accessed=2 * total * itemsize,
        ),
    )(x2d)

    out = out2d.reshape(-1)
    if padded_total != total:
        out = out[:total]
    return out.reshape(orig_shape)


def hard_sigmoid(x: jax.Array) -> jax.Array:
    return _elementwise_call(_hard_sigmoid_kernel, x)


def hard_swish(x: jax.Array) -> jax.Array:
    return _elementwise_call(_hard_swish_kernel, x)


# ----------------------------------------------------------------------------
# Fused SE module: avgpool -> 1x1 conv -> ReLU -> 1x1 conv -> hard-sigmoid -> x*gate
# ----------------------------------------------------------------------------

def _se_fused_kernel(x_ref, w1_ref, b1_ref, w2_ref, b2_ref, o_ref):
    # x_ref: (1, C, HW). Weights stored (in, out) so no in-kernel transpose.
    x = x_ref[...].astype(jnp.float32)
    pooled = jnp.mean(x, axis=2)                                        # (1, C)
    h = jnp.dot(pooled, w1_ref[...],
                preferred_element_type=jnp.float32) + b1_ref[...]       # (1, Cr)
    h = jnp.maximum(h, 0.0)                                             # ReLU
    g = jnp.dot(h, w2_ref[...],
                preferred_element_type=jnp.float32) + b2_ref[...]       # (1, C)
    # Hard-sigmoid fused into the matmul epilogue (free VPU filler).
    g = jnp.clip(g + 3.0, 0.0, 6.0) * (1.0 / 6.0)
    # Channel-wise gate applied to the activation tile already in VMEM.
    o_ref[...] = (x * g[:, :, None]).astype(o_ref.dtype)


def se_module(x, w1, b1, w2, b2):
    """Fused SE block, matching the PyTorch SE_Module forward.

    x:  (N, C, H, W) NCHW activation
    w1: (Cr, C, 1, 1) first 1x1 conv weight (PyTorch layout), b1: (Cr,)
    w2: (C, Cr, 1, 1) second 1x1 conv weight,                 b2: (C,)
    """
    N, C, H, W = x.shape
    Cr = w1.shape[0]
    HW = H * W
    itemsize = jnp.dtype(x.dtype).itemsize

    x3 = x.reshape(N, C, HW)
    # (out, in, 1, 1) -> (in, out): kernel computes (1,C)@(C,Cr), (1,Cr)@(Cr,C).
    w1_io = jnp.transpose(w1.reshape(Cr, C), (1, 0)).astype(jnp.float32)
    w2_io = jnp.transpose(w2.reshape(C, Cr), (1, 0)).astype(jnp.float32)
    b1_2d = b1.reshape(1, Cr).astype(jnp.float32)
    b2_2d = b2.reshape(1, C).astype(jnp.float32)

    out3 = pl.pallas_call(
        _se_fused_kernel,
        out_shape=jax.ShapeDtypeStruct((N, C, HW), x.dtype),
        grid_spec=pltpu.PrefetchScalarGridSpec(
            num_scalar_prefetch=0,
            grid=(N,),  # >= 2 parallel steps for batch >= 2 -> v7x megacore split
            in_specs=[
                pl.BlockSpec((1, C, HW), lambda n: (n, 0, 0)),
                pl.BlockSpec((C, Cr), lambda n: (0, 0)),
                pl.BlockSpec((1, Cr), lambda n: (0, 0)),
                pl.BlockSpec((Cr, C), lambda n: (0, 0)),
                pl.BlockSpec((1, C), lambda n: (0, 0)),
            ],
            out_specs=pl.BlockSpec((1, C, HW), lambda n: (n, 0, 0)),
        ),
        compiler_params=pltpu.CompilerParams(
            dimension_semantics=("parallel",),
            vmem_limit_bytes=32 << 20,
        ),
        cost_estimate=pl.CostEstimate(
            flops=N * (2 * C * HW + 4 * C * Cr),
            transcendentals=0,
            bytes_accessed=2 * N * C * HW * itemsize + 2 * C * Cr * 4,
        ),
    )(x3, w1_io, b1_2d, w2_io, b2_2d)
    return out3.reshape(N, C, H, W)


# ----------------------------------------------------------------------------
# Plain-JAX references (same semantics as the PyTorch modules)
# ----------------------------------------------------------------------------

def _hard_sigmoid_ref(x):
    return jnp.clip(x + 3.0, 0.0, 6.0) / 6.0


def _hard_swish_ref(x):
    return x * jnp.clip(x + 3.0, 0.0, 6.0) / 6.0


def _se_ref(x, w1, b1, w2, b2):
    pooled = jnp.mean(x, axis=(2, 3), keepdims=True)                 # (N,C,1,1)
    h = jnp.einsum('nchw,oc->nohw', pooled, w1.reshape(w1.shape[0], -1))
    h = jnp.maximum(h + b1[None, :, None, None], 0.0)
    g = jnp.einsum('nchw,oc->nohw', h, w2.reshape(w2.shape[0], -1))
    g = _hard_sigmoid_ref(g + b2[None, :, None, None])
    return x * g


if __name__ == "__main__":
    key = jax.random.PRNGKey(0)
    k1, k2, k3, k4, k5, k6, k7 = jax.random.split(key, 7)

    # ---- Fused SE block (e.g. a MobileNetV3 SE stage), small shapes ----
    N, C, H, W = 2, 40, 16, 16
    Cr = 16                               # make_divisible(40 // 4) = 16
    x_se = jax.random.normal(k1, (N, C, H, W), dtype=jnp.float32)
    w1 = jax.random.normal(k2, (Cr, C, 1, 1), dtype=jnp.float32) * 0.1
    b1 = jax.random.normal(k3, (Cr,), dtype=jnp.float32) * 0.1
    w2 = jax.random.normal(k4, (C, Cr, 1, 1), dtype=jnp.float32) * 0.1
    b2 = jax.random.normal(k5, (C,), dtype=jnp.float32) * 0.1

    y_se = jax.block_until_ready(se_module(x_se, w1, b1, w2, b2))
    y_se_ref = _se_ref(x_se, w1, b1, w2, b2)
    assert y_se.shape == x_se.shape and y_se.dtype == x_se.dtype
    assert jnp.allclose(y_se, y_se_ref, atol=1e-4, rtol=1e-4), "SE mismatch"

    # ---- Standalone hard-sigmoid (small, single-block path) ----
    x_hs = jax.random.normal(k6, (2, 4, 16, 16), dtype=jnp.float32) * 4.0
    y_hs = jax.block_until_ready(hard_sigmoid(x_hs))
    assert y_hs.shape == x_hs.shape and y_hs.dtype == x_hs.dtype
    assert jnp.allclose(y_hs, _hard_sigmoid_ref(x_hs), atol=1e-6), "hsig mismatch"

    # ---- Standalone hard-swish (multi-block, >= 2 parallel grid steps) ----
    x_hw = jax.random.normal(k7, (2, 96, 32, 32), dtype=jnp.float32) * 4.0
    y_hw = jax.block_until_ready(hard_swish(x_hw))
    assert y_hw.shape == x_hw.shape and y_hw.dtype == x_hw.dtype
    assert jnp.allclose(y_hw, _hard_swish_ref(x_hw), atol=1e-5), "hswish mismatch"

    print("KERNEL_OK")
</pallas_src>

<mosaic_0001>
module attributes {stable_mosaic.version = 11 : i64} {
  func.func @_se_fused_kernel(%arg0: i32, %arg1: memref<1x40x256xf32, #tpu.memory_space<vmem>>, %arg2: memref<40x16xf32, #tpu.memory_space<vmem>>, %arg3: memref<1x16xf32, #tpu.memory_space<vmem>>, %arg4: memref<16x40xf32, #tpu.memory_space<vmem>>, %arg5: memref<1x40xf32, #tpu.memory_space<vmem>>, %arg6: memref<1x40x256xf32, #tpu.memory_space<vmem>>) attributes {dimension_semantics = [#tpu.dimension_semantics<parallel>], iteration_bounds = array<i64: 2>, scalar_prefetch = 0 : i64, scratch_operands = 0 : i64, tpu.core_type = #tpu.core_type<tc>, window_params = [{transform_indices = @transform_0, window_bounds = array<i64: 1, 40, 256>}, {pipeline_mode = #tpu.pipeline_mode<synchronous>, transform_indices = @transform_1, window_bounds = array<i64: 40, 16>}, {pipeline_mode = #tpu.pipeline_mode<synchronous>, transform_indices = @transform_2, window_bounds = array<i64: 1, 16>}, {pipeline_mode = #tpu.pipeline_mode<synchronous>, transform_indices = @transform_3, window_bounds = array<i64: 16, 40>}, {pipeline_mode = #tpu.pipeline_mode<synchronous>, transform_indices = @transform_4, window_bounds = array<i64: 1, 40>}, {transform_indices = @transform_5, window_bounds = array<i64: 1, 40, 256>}]} {
    %c0 = arith.constant 0 : index
    %c0_0 = arith.constant 0 : index
    %c0_1 = arith.constant 0 : index
    %0 = vector.load %arg1[%c0, %c0_0, %c0_1] : memref<1x40x256xf32, #tpu.memory_space<vmem>>, vector<1x40x256xf32>
    %cst = arith.constant dense<0.000000e+00> : vector<1x40xf32>
    %1 = vector.multi_reduction <add>, %0, %cst [2] : vector<1x40x256xf32> to vector<1x40xf32>
    %cst_2 = arith.constant 2.560000e+02 : f32
    %2 = vector.broadcast %cst_2 : f32 to vector<1x40xf32>
    %3 = arith.divf %1, %2 : vector<1x40xf32>
    %c0_3 = arith.constant 0 : index
    %c0_4 = arith.constant 0 : index
    %4 = vector.load %arg2[%c0_3, %c0_4] : memref<40x16xf32, #tpu.memory_space<vmem>>, vector<40x16xf32>
    %cst_5 = arith.constant dense<0.000000e+00> : vector<1x16xf32>
    %5 = tpu.matmul %3, %4, %cst_5 {dimension_numbers = #tpu.dot_dimension_numbers<[1], [0], [0], [1], [0, 0, 1, 1], [], []>} : vector<1x40xf32>, vector<40x16xf32>, vector<1x16xf32> -> vector<1x16xf32>
    %c0_6 = arith.constant 0 : index
    %c0_7 = arith.constant 0 : index
    %6 = vector.load %arg3[%c0_6, %c0_7] : memref<1x16xf32, #tpu.memory_space<vmem>>, vector<1x16xf32>
    %7 = arith.addf %5, %6 : vector<1x16xf32>
    %cst_8 = arith.constant 0.000000e+00 : f32
    %8 = vector.broadcast %cst_8 : f32 to vector<1x16xf32>
    %9 = arith.maximumf %7, %8 : vector<1x16xf32>
    %c0_9 = arith.constant 0 : index
    %c0_10 = arith.constant 0 : index
    %10 = vector.load %arg4[%c0_9, %c0_10] : memref<16x40xf32, #tpu.memory_space<vmem>>, vector<16x40xf32>
    %cst_11 = arith.constant dense<0.000000e+00> : vector<1x40xf32>
    %11 = tpu.matmul %9, %10, %cst_11 {dimension_numbers = #tpu.dot_dimension_numbers<[1], [0], [0], [1], [0, 0, 1, 1], [], []>} : vector<1x16xf32>, vector<16x40xf32>, vector<1x40xf32> -> vector<1x40xf32>
    %c0_12 = arith.constant 0 : index
    %c0_13 = arith.constant 0 : index
    %12 = vector.load %arg5[%c0_12, %c0_13] : memref<1x40xf32, #tpu.memory_space<vmem>>, vector<1x40xf32>
    %13 = arith.addf %11, %12 : vector<1x40xf32>
    %cst_14 = arith.constant 3.000000e+00 : f32
    %14 = vector.broadcast %cst_14 : f32 to vector<1x40xf32>
    %15 = arith.addf %13, %14 : vector<1x40xf32>
    %cst_15 = arith.constant 0.000000e+00 : f32
    %cst_16 = arith.constant 6.000000e+00 : f32
    %16 = vector.broadcast %cst_15 : f32 to vector<1x40xf32>
    %17 = arith.maximumf %16, %15 : vector<1x40xf32>
    %18 = vector.broadcast %cst_16 : f32 to vector<1x40xf32>
    %19 = arith.minimumf %18, %17 : vector<1x40xf32>
    %cst_17 = arith.constant 0.166666672 : f32
    %20 = vector.broadcast %cst_17 : f32 to vector<1x40xf32>
    %21 = arith.mulf %19, %20 : vector<1x40xf32>
    %22 = vector.shape_cast %21 : vector<1x40xf32> to vector<1x40x1xf32>
    %23 = vector.broadcast %22 : vector<1x40x1xf32> to vector<1x40x256xf32>
    %24 = arith.mulf %0, %23 : vector<1x40x256xf32>
    %c0_18 = arith.constant 0 : index
    %c0_19 = arith.constant 0 : index
    %c0_20 = arith.constant 0 : index
    %25 = vector.load %arg6[%c0_18, %c0_19, %c0_20] : memref<1x40x256xf32, #tpu.memory_space<vmem>>, vector<1x40x256xf32>
    tpu.vector_store %arg6[%c0_18, %c0_19, %c0_20], %24 {strides = array<i32>} : memref<1x40x256xf32, #tpu.memory_space<vmem>>, vector<1x40x256xf32>,
    return
  }
  func.func @transform_0(%arg0: i32) -> (i32, i32, i32) {
    %c0_i32 = arith.constant 0 : i32
    %c0_i32_0 = arith.constant 0 : i32
    %c0_i32_1 = arith.constant 0 : i32
    return %arg0, %c0_i32, %c0_i32_0 : i32, i32, i32
  }
  func.func @transform_1(%arg0: i32) -> (i32, i32) {
    %c0_i32 = arith.constant 0 : i32
    %c0_i32_0 = arith.constant 0 : i32
    %c0_i32_1 = arith.constant 0 : i32
    return %c0_i32, %c0_i32_0 : i32, i32
  }
  func.func @transform_2(%arg0: i32) -> (i32, i32) {
    %c0_i32 = arith.constant 0 : i32
    %c0_i32_0 = arith.constant 0 : i32
    %c0_i32_1 = arith.constant 0 : i32
    return %c0_i32, %c0_i32_0 : i32, i32
  }
  func.func @transform_3(%arg0: i32) -> (i32, i32) {
    %c0_i32 = arith.constant 0 : i32
    %c0_i32_0 = arith.constant 0 : i32
    %c0_i32_1 = arith.constant 0 : i32
    return %c0_i32, %c0_i32_0 : i32, i32
  }
  func.func @transform_4(%arg0: i32) -> (i32, i32) {
    %c0_i32 = arith.constant 0 : i32
    %c0_i32_0 = arith.constant 0 : i32
    %c0_i32_1 = arith.constant 0 : i32
    return %c0_i32, %c0_i32_0 : i32, i32
  }
  func.func @transform_5(%arg0: i32) -> (i32, i32, i32) {
    %c0_i32 = arith.constant 0 : i32
    %c0_i32_0 = arith.constant 0 : i32
    %c0_i32_1 = arith.constant 0 : i32
    return %arg0, %c0_i32, %c0_i32_0 : i32, i32, i32
  }
}

</mosaic_0001>

<bundles_post_ra>
// kernel: tpu_custom_call.1
= control target key start
LH: loop header
LB: loop body
LE: loop exit
PB: predicated region body
PF: predicated region fallthrough
CT: control target
= control target key end

     0   :  { %10 = vsyncpa [#allocation3], 0  ;;  %s1073_s0 = inlined_call_operand.hbm [shape: f32[2,40,256], index: 0, kind: input, shape index: {}]   ;;  %s1074_s1 = inlined_call_operand.vmem [shape: f32[40,16], index: 1, kind: input, shape index: {}]   ;;  %s1075_s2 = inlined_call_operand.vmem [shape: f32[1,16], index: 2, kind: input, shape index: {}]   ;;  %s1076_s3 = inlined_call_operand.vmem [shape: f32[16,40], index: 3, kind: input, shape index: {}]   ;;  %s1077_s4 = inlined_call_operand.vmem [shape: f32[1,40], index: 4, kind: input, shape index: {}]   ;;  %s1078_s5 = inlined_call_operand.hbm [shape: f32[2,40,256], index: 5, kind: output, shape index: {}]  }
   0x1   :  { %12 = vsyncpa [#allocation3 + $0x1], 0 }
   0x2   :  { %13 = vsyncpa [#allocation4], 0 }
   0x3   :  { %15 = vsyncpa [#allocation4 + $0x1], 0  ;;  %s846_s18 = smov 0   ;;  %s848_s19 = smov 0  }
   0x4   :  { %s850_s20 = smov 0   ;;  %s852_s21 = smov 0  }
   0x5 LB: > { %s867_s22 = sadd.s32 4294967295, %s805_s21   ;;  %s604_s23 = sadd.s32 4294967294, %s805_s21   ;;  %s805_s21 = sphi %s852_s21, %s1090_s21   ;;  %s801_s20 = sphi %s850_s20, %s1089_s20   ;;  %s797_s19 = sphi %s848_s19, %s1088_s19   ;;  %s793_s18 = sphi %s846_s18, %s1087_s18  }
   0x6   : > { %s871_s24 = sadd.s32 1, %s805_s21   ;;  %s28_s25 = sadd.s32 1, %s801_s20 }
   0x7   : > { %s25_s26 = ssub.s32 %s805_s21, %s871_s24  ;;  %p35_p0 = scmp.ne.s32.totalorder %s801_s20, %s797_s19 }
   0x8   : > { %p26_p1 = scmp.eq.s32.totalorder %s25_s26, 0  ;;  %p36_p2 = scmp.eq.s32.totalorder %s805_s21, 0 }
   0x9   : > { %p41_p3 = scmp.ne.s32.totalorder %s797_s19, %s793_s18  ;;  %p42_p4 = scmp.eq.s32.totalorder %s867_s22, 0 }
   0xa   : > { %s883_s27 = scalar_select %p26_p1, %s801_s20, %s28_s25  }
   0xb   : > { %p37_p5 = por %p36_p2, %p35_p0  ;;  %p885_p6 = por %p42_p4, %p41_p3 }
   0xc   : > { %p149_p7 = scmp.eq.s32.totalorder %s867_s22, 1  ;;  %p155_p8 = scmp.eq.s32.totalorder %s604_s23, 1 }
   0xd   : > { %p668_p10 = scmp.lt.s32.totalorder %s805_s21, 2  ;;  %s187_s6 = sand.u32 1, %s801_s20  }
   0xe   : > { %p892_p11 = por %p149_p7, %p35_p0  ;;  %p896_p12 = por %p155_p8, %p41_p3 }
   0xf   : > { %s653_s7 = smul.u32 1280, %s805_s21  ;;  %p907_p13 = pnand %p668_p10, %p37_p5 }
  0x10   : > { %s1081_s29 = scalar_select %p892_p11, 1, 0 }
  0x11   : > { %s1082_s30 = scalar_select %p896_p12, 1, 0 }
  0x12   : > { %s652_s8 = smul.u32 80, %s187_s6  ;;  %s905_s11 = scalar_lea.hbm %s1073_s0, %s653_s7 }
  0x13   : > { %s913_s15 = scalar_lea.sflag [#allocation3], %s187_s6  ;;  %s709_s16 = scalar_lea.hbm %s905_s11, 1280 }
  0x14   : > { %s191_s13 = scalar_lea.vmem [#allocation2], %s652_s8  ;;  %p710_p0 = scmp.ne.s32.totalorder %s905_s11, %s709_s16 }
  0x15   : > { %s198_s14 = sshll.u32 %s191_s13, 4  ;;  %p711_p1 = pneg %p907_p13  ;;  %s911_s14 = int_to_ptr.vmem [resolvable:$true] %s198_s14 }
  0x16   : > { %s714_s25 = scalar_lea.hbm %s1073_s0, 2560  ;;  %p715_p4 = scmp.lt.u32.totalorder %s905_s11, %s1073_s0 }
  0x17   : > { %p712_p2 = pnand %p711_p1, %p710_p0  ;;  %p716_p5 = scmp.lt.u32.totalorder %s714_s25, %s709_s16 }
  0x18   : > { %p718_p8 = scmp.lt.u32.totalorder %s709_s16, %s905_s11 }
  0x19   : > { %p713_p3 = pneg %p712_p2  ;;  %p717_p7 = por %p716_p5, %p715_p4 }
  0x1b   : > { %p719_p10 = por %p718_p8, %p717_p7 }
  0x1d   : > { %p720_p9 = pnand %p719_p10, %p713_p3 }
  0x1f   : > { %723 = shalt.err (!%p720_p9)
}
  0x20   : > { %s724_s6 = scalar_lea.vmem %s911_s14, 1280  ;;  %s807_s8 = smov [#allocation2]  }
  0x21   : > { %p725_p0 = scmp.ne.s32.totalorder %s911_s14, %s724_s6  ;;  %s729_s9 = sshll.u32 %s807_s8, 4  ;;  %s730_s9 = int_to_ptr.vmem [resolvable:$false] %s729_s9 }
  0x22   : > { %s731_s10 = scalar_lea.vmem %s730_s9, 2560  ;;  %p732_p11 = scmp.lt.s32.totalorder %s911_s14, %s730_s9 }
  0x23   : > { %p727_p2 = pnand %p725_p0, %p711_p1  ;;  %p733_p4 = scmp.lt.s32.totalorder %s731_s10, %s724_s6 }
  0x25   : > { %p728_p12 = pneg %p727_p2  ;;  %p734_p5 = por %p733_p4, %p732_p11 }
  0x27   : > { %p735_p7 = pnand %p734_p5, %p728_p12 }
  0x29   : > { %738 = shalt.err (!%p735_p7)
}
  0x2a   : > { %s808_s13 = smov 256   ;;  %s809_s16 = smov 16  }
  0x2b   : > { %663 = dma.hbm_to_vmem [thread:$0]  (!%p907_p13), %s905_s11, 1280, %s911_s14, %s913_s15, %s808_s13, %s808_s13, %s809_s16  }
  0x2c   : > { %p608_p9 = scmp.ge.s32.totalorder %s805_s21, 1  ;;  %p206_p1 = scmp.lt.s32.totalorder %s805_s21, 3 }
  0x2e   : > { %p207_p3 = pnand %p608_p9, %p206_p1 }
  0x2f   : > { %s944_s17 = sand.u32 (!%p207_p3), 1, %s797_s19  }
  0x30   : > { %210 = sbr.rel (%p207_p3) target bundleno = 798 (0x31e), region = 40  ;;  %s213_s25 = scalar_lea.sflag (!%p207_p3), [#allocation3], %s944_s17 }
  0x31   : > { %s654_s23 = smul.u32 (!%p207_p3), 80, %s944_s17 }
  0x33   : > { %s216_s26 = scalar_lea.vmem (!%p207_p3), [#allocation2], %s654_s23 }
  0x37   : > { %784 = dma.done.wait (%p885_p6), %s213_s25, 1280  }
  0x38   : > { %786 = vsyncadd (%p885_p6), %s213_s25, 4294966016  ;;  %v954_v0 = vld [vmem:[%s216_s26] sm:$0xff]  ;;  %v956_v1 = vld [vmem:[%s216_s26 + $0x8] sm:$0xff]  ;;  %v810_v18 = vmov 0.0|0.0   ;;  %v811_v23 = vmov 0.0   ;;  %vm812_vm0 = vmmov 0   ;;  %v285_v24 = vlaneseq }
  0x39   : > { %v958_v2 = vld [vmem:[%s216_s26 + $0x20] sm:$0xff]  ;;  %v253_v3 = vadd.f32 %v956_v1, %v954_v0  ;;  %v962_v4 = vld [vmem:[%s216_s26 + $0x28] sm:$0xff]  ;;  %v964_v5 = vld [vmem:[%s216_s26 + $0x10] sm:$0xff]  ;;  %643 = vmatprep.subr.bf16.mxu0 %v810_v18  ;;  %649 = vmatprep.subr.bf16.mxu1 %v810_v18  ;;  %vm296_vm1 = vcmask 130112   ;;  %vm303_vm2 = vcmask 195712   ;;  %vm310_vm3 = vcmask 261312  }
  0x3a   : > { %v966_v6 = vld [vmem:[%s216_s26 + $0x18] sm:$0xff]  ;;  %v259_v7 = vadd.f32 %v962_v4, %v958_v2  ;;  %v970_v8 = vld [vmem:[%s216_s26 + $0x30] sm:$0xff]  ;;  %v978_v12 = vld [vmem:[%s216_s26 + $0x40] sm:$0xff]  ;;  %633 = vmatprep.mubr.msk.f32.mxu0 %vm812_vm0, %v811_v23  ;;  %640 = vmatprep.mubr.msk.f32.mxu1 %vm812_vm0, %v811_v23  ;;  %v286_v25 = vand.u32 127, %v285_v24  ;;  %v288_v26 = vshrl.u32 %v285_v24, 7  ;;  %vm317_vm4 = vcmask 326912  }
  0x3b   : > { %v972_v9 = vld [vmem:[%s216_s26 + $0x38] sm:$0xff]  ;;  %254 = vadd.xlane.f32.xlu0 %v253_v3  ;;  %v256_v10 = vadd.f32 %v966_v6, %v964_v5  ;;  %v980_v13 = vld [vmem:[%s216_s26 + $0x48] sm:$0xff]  ;;  %v274_v15 = vld [vmem:[%s1074_s1] sm:$0xff]  ;;  %vm319_vm5 = vcmask 326656   ;;  %vm396_vm6 = vcmask 130048   ;;  %s242_s15 = scalar_lea.vmem [#allocation5], %s654_s23 }
  0x3c   : > { %260 = vadd.xlane.f32.xlu1 %v259_v7  ;;  %v262_v11 = vadd.f32 %v972_v9, %v970_v8  ;;  %v265_v14 = vadd.f32 %v980_v13, %v978_v12  ;;  %v275_v16 = vld [vmem:[%s1074_s1 + $0x8] sm:$0xff]  ;;  %v276_v19 = vld [vmem:[%s1074_s1 + $0x10] sm:$0xff]  ;;  %v277_v20 = vld [vmem:[%s1074_s1 + $0x18] sm:$0xff]  ;;  %v291_v27 = vadd.s32 4294967288, %v286_v25  ;;  %v298_v29 = vadd.s32 4294967280, %v286_v25  ;;  %s655_s7 = smul.u32 1280, %s867_s22 }
  0x3d   : > { %v644_v17 = vpack.c.bf16 %v275_v16, %v274_v15  ;;  %v647_v21 = vpack.c.bf16 %v277_v20, %v276_v19  ;;  %v278_v22 = vld [vmem:[%s1074_s1 + $0x20] sm:$0xff]  ;;  %v305_v30 = vadd.s32 4294967272, %v286_v25  ;;  %v289_v32 = vsub.s32 %v286_v25, %v288_v26  ;;  %v394_v56 = vld [vmem:[%s1076_s3 + $0x8] sm:$0xff]  ;;  %s531_s23 = sshll.u32 %s242_s15, 4  ;;  %s518_s22 = scalar_lea.sflag [#allocation4], %s944_s17  ;;  %s1027_s23 = int_to_ptr.vmem [resolvable:$true] %s531_s23 }
  0x3e   : > { %v294_v34 = vsub.s32 %v291_v27, %v288_v26  ;;  %v312_v35 = vadd.s32 4294967264, %v286_v25  ;;  %v301_v36 = vsub.s32 %v298_v29, %v288_v26  ;;  %v393_v55 = vld [vmem:[%s1076_s3] sm:$0xff]  ;;  %v476_v16 = vsub.s32 0, %v288_v26  ;;  %s1025_s9 = scalar_lea.hbm %s1078_s5, %s655_s7  ;;  %s739_s10 = scalar_lea.vmem %s1027_s23, 1280 }
  0x3f   : > { %257 = vadd.xlane.f32.xlu0 %v256_v10  ;;  %645 = vmatpush3.bf16.msra.mxu0 %v644_v17  ;;  %v308_v39 = vsub.s32 %v305_v30, %v288_v26  ;;  %v650_v57 = vpack.c.bf16 %v394_v56, %v393_v55  ;;  %v279_v58 = vld [vmem:[%s1075_s2] sm:$0x1]  ;;  %p740_p6 = scmp.ne.s32.totalorder %s1027_s23, %s739_s10  ;;  %p1084_p11 = scmp.ne.s32.totalorder %s1081_s29, 0 }
  0x40   : > { %263 = vadd.xlane.f32.xlu1 %v262_v11  ;;  %646 = vmatprep.subr.bf16.mxu0 %v810_v18  ;;  %v315_v45 = vsub.s32 %v312_v35, %v288_v26  ;;  %v395_v63 = vld [vmem:[%s1077_s4] sm:$0x1]  ;;  %s813_s13 = smov [#allocation5]  }
  0x41   : > { %651 = vmatpush3.bf16.msra.mxu1 %v650_v57  ;;  %p741_p12 = pnand %p740_p6, %p1084_p11  ;;  %s743_s16 = sshll.u32 %s813_s13, 4  ;;  %s744_s16 = int_to_ptr.vmem [resolvable:$false] %s743_s16 }
  0x42   : > { %s745_s25 = scalar_lea.vmem %s744_s16, 2560  ;;  %p746_p8 = scmp.lt.s32.totalorder %s1027_s23, %s744_s16 }
  0x43   : > { %266 = vadd.xlane.f32.xlu0 %v265_v14  ;;  %648 = vmatpush3.bf16.msra.mxu0 %v647_v21  ;;  %p742_p13 = pneg %p741_p12  ;;  %p747_p10 = scmp.lt.s32.totalorder %s745_s25, %s739_s10 }
  0x44   : > { %631 = vmatprep.subr.mxu0 %v811_v23 }
  0x45   : > { %p748_p0 = por %p747_p10, %p746_p8 }
  0x47   : > { %632 = vmatpush3.msra.mxu0 %v278_v22  ;;  %p749_p2 = pnand %p748_p0, %p742_p13 }
  0xc8   : > { %v255_v28 = vpop.xlane.xlu0 %254 }
  0xc9   : > { %v261_v31 = vpop.xlane.xlu1 %260  ;;  %v269_v33 = vmul.f32 0.00390625, %v255_v28 }
  0xca   : > { %v271_v37 = vmul.f32 0.00390625, %v261_v31 }
  0xcb   : > { %v290_v43 = vrot.slane %v269_v33, %v289_v32 }
  0xcc   : > { %v258_v38 = vpop.xlane.xlu0 %257  ;;  %v302_v46 = vrot.slane %v271_v37, %v301_v36 }
  0xcd   : > { %v270_v40 = vmul.f32 0.00390625, %v258_v38  ;;  %v264_v41 = vpop.xlane.xlu1 %263 }
  0xce   : > { %v272_v42 = vmul.f32 0.00390625, %v264_v41 }
  0xcf   : > { %v295_v44 = vrot.slane %v270_v40, %v294_v34 }
  0xd0   : > { %v309_v47 = vrot.slane %v272_v42, %v308_v39  ;;  %v267_v48 = vpop.xlane.xlu0 %266 }
  0xd1   : > { %v297_v49 = vsel %vm296_vm1, %v295_v44, %v290_v43  ;;  %v273_v50 = vmul.f32 0.00390625, %v267_v48 }
  0xd2   : > { %v304_v51 = vsel %vm303_vm2, %v302_v46, %v297_v49 }
  0xd3   : > { %v316_v52 = vrot.slane %v273_v50, %v315_v45  ;;  %v311_v53 = vsel %vm310_vm3, %v309_v47, %v304_v51 }
  0xd5   : > { %v318_v54 = vsel %vm317_vm4, %v316_v52, %v311_v53 }
  0xd6   : > { %634 = vmatmul.mubr.msk.f32.vlgmr.msra.gmra.mrb[0].mxu0 %vm319_vm5, %v318_v54 }
 0x1a9   : > { %v388_v59 = vpop.f32.mrb[0].mxu0 }
 0x1aa   : > { %v389_v60 = vadd.f32 %v388_v59, %v279_v58  ;;  %v635_v61 = vpop.f32.mrb[1].mxu0 }
 0x1ac   : > { %v392_v62 = vmax.f32 %v389_v60, 0.0 }
 0x1ae   : > { %641 = vmatmul.mubr.msk.f32.vlgmr.msra.gmra.mrb[0].mxu1 %vm396_vm6, %v392_v62 }
 0x281   : > { %v466_v3 = vpop.f32.mrb[0].mxu1 }
 0x282   : > { %v467_v7 = vadd.f32 %v466_v3, %v395_v63  ;;  %v642_v10 = vpop.f32.mrb[1].mxu1 }
 0x284   : > { %v470_v11 = vadd.f32 3.0, %v467_v7 }
 0x286   : > { %v471_v14 = vmax.f32 %v470_v11, 0.0 }
 0x288   : > { %v472_v15 = vmin.f32 %v471_v14, 6.0 }
 0x28a   : > { %v473_v17 = vmul.f32 0.16666667, %v472_v15 }
 0x28c   : > { %v477_v18 = vrot.slane %v473_v17, %v476_v16 }
 0x28e   : > { %483 = vbcast.lane.b32.xlu0 %v477_v18, 264  ;;  %479 = vbcast.lane.b32.xlu1 %v477_v18, 256 }
 0x292   : > { %487 = vbcast.lane.b32.xlu1 %v477_v18, 272 }
 0x296   : > { %491 = vbcast.lane.b32.xlu1 %v477_v18, 280 }
 0x29a   : > { %495 = vbcast.lane.b32.xlu1 %v477_v18, 288 }
 0x300   : > { %v484_v19 = vpop.permute.xlu0 %483  ;;  %v480_v20 = vpop.permute.xlu1 %479 }
 0x301   : > { %v499_v21 = vmul.f32 %v484_v19, %v964_v5  ;;  %v500_v22 = vmul.f32 %v484_v19, %v966_v6  ;;  %v497_v23 = vmul.f32 %v480_v20, %v954_v0  ;;  %v498_v24 = vmul.f32 %v480_v20, %v956_v1 }
 0x303   : > { %509 = vst [vmem:[%s242_s15 + $0x10] sm:$0xff] %v499_v21  ;;  %510 = vst [vmem:[%s242_s15 + $0x18] sm:$0xff] %v500_v22 }
 0x304   : > { %507 = vst [vmem:[%s242_s15] sm:$0xff] %v497_v23  ;;  %508 = vst [vmem:[%s242_s15 + $0x8] sm:$0xff] %v498_v24  ;;  %v488_v25 = vpop.permute.xlu1 %487 }
 0x305   : > { %v501_v26 = vmul.f32 %v488_v25, %v958_v2  ;;  %v502_v27 = vmul.f32 %v488_v25, %v962_v4 }
 0x307   : > { %511 = vst [vmem:[%s242_s15 + $0x20] sm:$0xff] %v501_v26  ;;  %512 = vst [vmem:[%s242_s15 + $0x28] sm:$0xff] %v502_v27 }
 0x308   : > { %v492_v5 = vpop.permute.xlu1 %491 }
 0x309   : > { %v503_v0 = vmul.f32 %v492_v5, %v970_v8  ;;  %v504_v1 = vmul.f32 %v492_v5, %v972_v9 }
 0x30b   : > { %513 = vst [vmem:[%s242_s15 + $0x30] sm:$0xff] %v503_v0  ;;  %514 = vst [vmem:[%s242_s15 + $0x38] sm:$0xff] %v504_v1 }
 0x30c   : > { %v496_v6 = vpop.permute.xlu1 %495 }
 0x30d   : > { %v505_v2 = vmul.f32 %v496_v6, %v978_v12  ;;  %v506_v4 = vmul.f32 %v496_v6, %v980_v13 }
 0x30f   : > { %515 = vst [vmem:[%s242_s15 + $0x40] sm:$0xff] %v505_v2  ;;  %516 = vst [vmem:[%s242_s15 + $0x48] sm:$0xff] %v506_v4 }
 0x310   : > { %752 = shalt.err (!%p749_p2)
}
 0x311   : > { %s753_s26 = scalar_lea.hbm %s1025_s9, 1280  ;;  %s757_s12 = scalar_lea.hbm %s1078_s5, 2560 }
 0x312   : > { %p754_p4 = scmp.ne.s32.totalorder %s1025_s9, %s753_s26  ;;  %p758_p9 = scmp.lt.u32.totalorder %s1025_s9, %s1078_s5 }
 0x313   : > { %p759_p1 = scmp.lt.u32.totalorder %s757_s12, %s753_s26  ;;  %p761_p6 = scmp.lt.u32.totalorder %s753_s26, %s1025_s9 }
 0x314   : > { %p755_p5 = pnand %p754_p4, %p1084_p11 }
 0x315   : > { %p760_p3 = por %p759_p1, %p758_p9 }
 0x316   : > { %p756_p7 = pneg %p755_p5 }
 0x317   : > { %p762_p12 = por %p761_p6, %p760_p3 }
 0x319   : > { %p763_p13 = pnand %p762_p12, %p756_p7 }
 0x31b   : > { %766 = shalt.err (!%p763_p13)
}
 0x31c   : > { %s814_s7 = smov 256   ;;  %s815_s6 = smov 16  }
 0x31d   : > { %658 = dma.vmem_to_hbm [thread:$0]  (%p1084_p11), %s1027_s23, 1280, %s1025_s9, %s518_s22, %s814_s7, %s814_s7, %s815_s6  }
 0x31e PF: > { %s546_s8 = sand.u32 1, %s793_s18   ;;  %p1085_p8 = scmp.ne.s32.totalorder %s1082_s30, 0 }
 0x31f   : > { %p1086_p10 = scmp.ge.s32.totalorder %s805_s21, 2  ;;  %s547_s10 = scalar_lea.sflag [#allocation4], %s546_s8 }
 0x321   : > { %p665_p0 = pnand %p1086_p10, %p1085_p8 }
 0x323   : > { %788 = dma.done.wait (!%p665_p0), %s547_s10, 1280  }
 0x324   : > { %790 = vsyncadd (!%p665_p0), %s547_s10, 4294966016  ;;  %p18_p2 = scmp.ge.s32.totalorder %s871_s24, 4   ;;  %s1087_s18 = smov %s797_s19 }
 0x325   : > { %s1088_s19 = smov %s801_s20  ;;  %s1089_s20 = smov %s883_s27 }
 0x326   : > { %s1090_s21 = smov %s871_s24  ;;  %20 = sbr.rel (!%p18_p2) target bundleno = 5 (0x5), region = 85 }
 0x32d   :  { %552 = vsyncpa [#allocation3], 1 }
 0x32e   :  { %554 = vsyncpa [#allocation3 + $0x1], 1 }
 0x32f   :  { %555 = vsyncpa [#allocation4], 1 }
 0x330   :  { %557 = vsyncpa [#allocation4 + $0x1], 1 }

</bundles_post_ra>
